<compile_context>
chip_gen: v6e
topology: v6e:2x2x1
jax: 0.10.0
libtpu: 0.0.40
codegen_flags: <defaults>
</compile_context>

<pallas_src>
import functools

import jax
import jax.numpy as jnp
from jax import lax
from jax.experimental import pallas as pl
from jax.experimental.pallas import tpu as pltpu


# --------------------------------------------------------------------------
# Fused kernel: conv3x3(+folded BN scale) + bias + ReLU, twice, Nb images/step.
# --------------------------------------------------------------------------
def fused_convblock_kernel(x_ref, w1_ref, b1_ref, w2_ref, b2_ref, out_ref,
                           h_ref, *, nb, h_img, hp):
    """Both layers fused; `nb` images per grid step, stacked along sublanes.

    Row layouts (all store offsets / lengths are multiples of 8 -> unmasked):
      x_ref  : (nb*hp, W*Cin)    bf16.  Image i: row i*hp is the top zero-pad
               row, rows i*hp+1 .. i*hp+h_img hold the image, rest are zero.
      w*_ref : (3, W*Ci, W*Co)   bf16 banded weights per kh tap (BN folded).
      b*_ref : (1, W*Co)         f32 folded BN bias, tiled over W.
      h_ref  : (8+nb*hp, W*Cmid) bf16 scratch.  Image i data rows start at the
               8-aligned offset 8+i*hp; rows 0..7 and the 8 rows after every
               image stay zero (= SAME padding along H for layer 2).
      out_ref: (nb*h_img, W*Cout) bf16, dense (image i at rows i*h_img ..).
    """
    m = nb * hp - 2   # rows per shifted slab; acc row i*hp + h <-> (image i, h)

    def band_matmuls(src_ref, row0, w_ref):
        # out[r] = sum_kh src[row0 + kh + r, :] @ W_kh   (f32 MXU accumulation)
        acc = jnp.dot(src_ref[row0 + 0:row0 + 0 + m, :], w_ref[0],
                      preferred_element_type=jnp.float32)
        acc = acc + jnp.dot(src_ref[row0 + 1:row0 + 1 + m, :], w_ref[1],
                            preferred_element_type=jnp.float32)
        acc = acc + jnp.dot(src_ref[row0 + 2:row0 + 2 + m, :], w_ref[2],
                            preferred_element_type=jnp.float32)
        return acc

    # ---- layer 1: conv3x3 (BN1 scale pre-folded) + bias + ReLU -> bf16 scratch
    acc1 = band_matmuls(x_ref, 0, w1_ref)                    # (m, W*Cmid) f32

    # Pad rows are rewritten every step: with a "parallel" batch grid axis each
    # TensorCore has its own scratch and may never execute program_id(0) == 0,
    # so a first-step pl.when guard would be unsafe on v7x megacore.
    zpad = jnp.zeros((hp - h_img, h_ref.shape[1]), h_ref.dtype)     # 8 rows
    h_ref[0:8, :] = jnp.zeros((8, h_ref.shape[1]), h_ref.dtype)
    for i in range(nb):
        base = 8 + i * hp
        hi = jnp.maximum(acc1[i * hp:i * hp + h_img, :] + b1_ref[...], 0.0)
        h_ref[base:base + h_img, :] = hi.astype(h_ref.dtype)        # aligned
        h_ref[base + h_img:base + hp, :] = zpad                     # aligned

    # ---- layer 2: conv3x3 (BN2 scale pre-folded) + bias + ReLU -> bf16 out
    acc2 = band_matmuls(h_ref, 7, w2_ref)                    # (m, W*Cout) f32
    for i in range(nb):
        yi = jnp.maximum(acc2[i * hp:i * hp + h_img, :] + b2_ref[...], 0.0)
        out_ref[i * h_img:(i + 1) * h_img, :] = yi.astype(out_ref.dtype)


# --------------------------------------------------------------------------
# Parameter preparation (one-time, outside the hot path).
# --------------------------------------------------------------------------
def _build_banded_weights(w_hwio, bn_scale, W):
    """(3,3,Ci,Co) conv weights + BN scale -> (3, W*Ci, W*Co) banded matrices.

    mats[kh][(w+kw-1)*Ci + ci, w*Co + co] = w_hwio[kh,kw,ci,co] * bn_scale[co]
    for 0 <= w+kw-1 < W, zero elsewhere: a width-SAME 3x3 conv becomes a plain
    matmul over the lane-flattened (W*Ci) axis.
    """
    _, _, Ci, Co = w_hwio.shape
    ws = (w_hwio * bn_scale[None, None, None, :]).astype(jnp.float32)
    mats = []
    for kh in range(3):
        band = ws[kh].reshape(3 * Ci, Co)                   # rows = kw*Ci + ci
        ext = jnp.zeros(((W + 2) * Ci, W * Co), jnp.float32)
        for w in range(W):                                  # disjoint col blocks
            ext = lax.dynamic_update_slice(ext, band, (w * Ci, w * Co))
        mats.append(ext[Ci:(W + 1) * Ci, :])                # drop virtual W-pad
    return jnp.stack(mats).astype(jnp.bfloat16)             # (3, W*Ci, W*Co)


def prepare_fused_params(p, W):
    """Fold BN (eval mode) into conv weights/biases and band them for width W."""
    return dict(
        w1=_build_banded_weights(p["w1"], p["s1"], W),
        b1=jnp.tile(p["b1"], W)[None, :].astype(jnp.float32),
        w2=_build_banded_weights(p["w2"], p["s2"], W),
        b2=jnp.tile(p["b2"], W)[None, :].astype(jnp.float32),
    )


def make_convblock_params(key, in_channels, out_channels, mid_channels=None,
                          eps=1e-5):
    """Deterministic synthetic parameters matching nn.Conv2d/nn.BatchNorm2d."""
    if not mid_channels:
        mid_channels = out_channels
    ks = jax.random.split(key, 10)

    def bn_fold(kg, kb, km, kv, c):
        gamma = 1.0 + 0.1 * jax.random.normal(kg, (c,), jnp.float32)
        beta = 0.1 * jax.random.normal(kb, (c,), jnp.float32)
        running_mean = 0.05 * jax.random.normal(km, (c,), jnp.float32)
        running_var = 1.0 + 0.1 * jax.random.uniform(kv, (c,), jnp.float32)
        scale = gamma / jnp.sqrt(running_var + eps)
        bias = beta - running_mean * scale
        return scale, bias

    w1 = (jax.random.normal(ks[0], (3, 3, in_channels, mid_channels), jnp.float32)
          * (2.0 / (9 * in_channels)) ** 0.5)
    w2 = (jax.random.normal(ks[1], (3, 3, mid_channels, out_channels), jnp.float32)
          * (2.0 / (9 * mid_channels)) ** 0.5)
    s1, b1 = bn_fold(ks[2], ks[3], ks[4], ks[5], mid_channels)
    s2, b2 = bn_fold(ks[6], ks[7], ks[8], ks[9], out_channels)
    return dict(w1=w1, s1=s1, b1=b1, w2=w2, s2=s2, b2=b2)


# --------------------------------------------------------------------------
# Kernel launcher (folded layout) + PyTorch-style NCHW wrapper.
# --------------------------------------------------------------------------
def _pick_image_block(n_imgs, hp, target_rows=256):
    """Largest divisor Nb of N with Nb*hp <= target_rows (M ~ 256 rows for the
    v6e/v7x MXU); keep >= 2 grid steps when possible so both v7x TensorCores
    get work under dimension_semantics=('parallel',)."""
    divisors = [d for d in range(1, n_imgs + 1) if n_imgs % d == 0]
    cands = [d for d in divisors if d * hp <= target_rows] or [1]
    nb = max(cands)
    if n_imgs // nb < 2:
        two_step = [d for d in cands if n_imgs // d >= 2]
        if two_step:
            nb = max(two_step)
    return nb


def conv_block_apply_folded(x_rows, w1b, b1r, w2b, b2r, *, n_imgs, h_img, width):
    """Fused ConvBlock on activations already in the folded padded-row layout.

    x_rows: (n_imgs*hp, width*Cin) bf16  (see _fold_nchw_to_rows).
    Returns (n_imgs*h_img, width*Cout) bf16.
    For chains of ConvBlocks, stay in this layout between blocks and skip the
    NCHW <-> folded conversions in conv_block_forward (they are interface-only
    and each costs a full HBM pass over the activation).
    """
    hp = x_rows.shape[0] // n_imgs
    cin = x_rows.shape[1] // width
    cmid = w1b.shape[-1] // width
    cout = w2b.shape[-1] // width
    assert w1b.shape == (3, width * cin, width * cmid)
    assert w2b.shape == (3, width * cmid, width * cout)
    assert h_img % 8 == 0 and hp == h_img + 8

    nb = _pick_image_block(n_imgs, hp)
    grid = (n_imgs // nb,)
    m = nb * hp - 2

    # VMEM budget from actual buffers: double-buffered blocks + one scratch.
    step_bytes = 2 * (nb * hp * width * cin * 2
                      + 3 * width * cin * width * cmid * 2
                      + width * cmid * 4
                      + 3 * width * cmid * width * cout * 2
                      + width * cout * 4
                      + nb * h_img * width * cout * 2)
    step_bytes += (8 + nb * hp) * width * cmid * 2
    vmem_limit = int(min(64 * 2**20, max(32 * 2**20, 2 * step_bytes + (8 << 20))))

    flops = grid[0] * 2 * 3 * m * (width * cin * width * cmid
                                   + width * cmid * width * cout)
    bytes_accessed = (n_imgs * hp * width * cin * 2
                      + 3 * width * cin * width * cmid * 2
                      + 3 * width * cmid * width * cout * 2
                      + width * (cmid + cout) * 4
                      + n_imgs * h_img * width * cout * 2)

    kernel = functools.partial(fused_convblock_kernel, nb=nb, h_img=h_img, hp=hp)
    return pl.pallas_call(
        kernel,
        out_shape=jax.ShapeDtypeStruct((n_imgs * h_img, width * cout),
                                       jnp.bfloat16),
        grid_spec=pltpu.PrefetchScalarGridSpec(
            num_scalar_prefetch=0,
            grid=grid,
            in_specs=[
                pl.BlockSpec((nb * hp, width * cin), lambda n: (n, 0)),
                pl.BlockSpec((3, width * cin, width * cmid), lambda n: (0, 0, 0)),
                pl.BlockSpec((1, width * cmid), lambda n: (0, 0)),
                pl.BlockSpec((3, width * cmid, width * cout), lambda n: (0, 0, 0)),
                pl.BlockSpec((1, width * cout), lambda n: (0, 0)),
            ],
            out_specs=pl.BlockSpec((nb * h_img, width * cout), lambda n: (n, 0)),
            scratch_shapes=[pltpu.VMEM((8 + nb * hp, width * cmid), jnp.bfloat16)],
        ),
        compiler_params=pltpu.CompilerParams(
            dimension_semantics=("parallel",),
            vmem_limit_bytes=vmem_limit,
        ),
        cost_estimate=pl.CostEstimate(flops=flops, transcendentals=0,
                                      bytes_accessed=bytes_accessed),
    )(x_rows, w1b, b1r, w2b, b2r)


def _fold_nchw_to_rows(x_nchw, hp):
    """NCHW -> folded padded-row layout (N*hp, W*C) bf16.  Per image: row 0 is
    the top SAME-pad zero row, rows 1..H hold the image, rows H+1..hp-1 zero."""
    n, c, h, w = x_nchw.shape
    x = jnp.transpose(x_nchw, (0, 2, 3, 1)).reshape(n, h, w * c)
    x = jnp.pad(x.astype(jnp.bfloat16), ((0, 0), (1, hp - h - 1), (0, 0)))
    return x.reshape(n * hp, w * c)


@jax.jit
def conv_block_forward(x_nchw, w1b, b1r, w2b, b2r):
    """PyTorch-interface forward: NCHW f32 in -> NCHW f32 out."""
    n, cin, h, w = x_nchw.shape
    assert h % 8 == 0, "TODO(synk): generalize to H not a multiple of 8"
    hp = h + 8                                 # 8-aligned per-image row stride
    cout = w2b.shape[-1] // w
    x_rows = _fold_nchw_to_rows(x_nchw, hp)
    y_rows = conv_block_apply_folded(x_rows, w1b, b1r, w2b, b2r,
                                     n_imgs=n, h_img=h, width=w)
    y = y_rows.reshape(n, h, w, cout)
    return jnp.transpose(y, (0, 3, 1, 2)).astype(jnp.float32)


# --------------------------------------------------------------------------
# References.
# --------------------------------------------------------------------------
def _ref_forward_f32(x_nchw, p):
    """Original module semantics (eval-mode BN), full f32."""
    x = jnp.transpose(x_nchw, (0, 2, 3, 1))

    def layer(z, w, s, b):
        y = lax.conv_general_dilated(z, w, (1, 1), "SAME",
                                     dimension_numbers=("NHWC", "HWIO", "NHWC"))
        return jnp.maximum(y * s + b, 0.0)

    h = layer(x, p["w1"], p["s1"], p["b1"])
    y = layer(h, p["w2"], p["s2"], p["b2"])
    return jnp.transpose(y, (0, 3, 1, 2))


def _ref_forward_bf16(x_nchw, p):
    """Same numerics as the kernel: bf16 operands, f32 accumulation, BN scale
    folded into weights, bf16 intermediate."""
    x = jnp.transpose(x_nchw, (0, 2, 3, 1)).astype(jnp.bfloat16)

    def layer(z, w, s, b):
        ws = (w * s[None, None, None, :]).astype(jnp.bfloat16)
        y = lax.conv_general_dilated(z, ws, (1, 1), "SAME",
                                     dimension_numbers=("NHWC", "HWIO", "NHWC"),
                                     preferred_element_type=jnp.float32)
        return jnp.maximum(y + b, 0.0)

    h = layer(x, p["w1"], p["s1"], p["b1"]).astype(jnp.bfloat16)
    y = layer(h, p["w2"], p["s2"], p["b2"])
    return jnp.transpose(y, (0, 3, 1, 2))


if __name__ == "__main__":
    key = jax.random.PRNGKey(0)
    k_x, k_p = jax.random.split(key)

    N, C_IN, C_OUT, H, W = 2, 4, 8, 16, 16
    x = jax.random.normal(k_x, (N, C_IN, H, W), jnp.float32)       # NCHW
    params = make_convblock_params(k_p, C_IN, C_OUT)
    fused = prepare_fused_params(params, W)                        # one-time prep

    out = conv_block_forward(x, fused["w1"], fused["b1"],
                             fused["w2"], fused["b2"])
    out = jax.block_until_ready(out)
    assert out.shape == (N, C_OUT, H, W), out.shape

    # Numerics-matched reference (bf16 operands, f32 accumulation, bf16 output).
    ref16 = _ref_forward_bf16(x, params).astype(jnp.bfloat16).astype(jnp.float32)
    ref16 = jax.block_until_ready(ref16)
    err16 = float(jnp.max(jnp.abs(out - ref16)))
    assert err16 < 1e-1, err16

    # Loose check against the original full-f32 module semantics.
    ref32 = jax.block_until_ready(_ref_forward_f32(x, params))
    assert jnp.allclose(out, ref32, atol=2e-1, rtol=2e-1), \
        float(jnp.max(jnp.abs(out - ref32)))

    print("KERNEL_OK")
</pallas_src>

<mosaic_0001>
module attributes {stable_mosaic.version = 11 : i64} {
  func.func @fused_convblock_kernel(%arg0: i32, %arg1: memref<24x64xbf16, #tpu.memory_space<vmem>>, %arg2: memref<3x64x128xbf16, #tpu.memory_space<vmem>>, %arg3: memref<1x128xf32, #tpu.memory_space<vmem>>, %arg4: memref<3x128x128xbf16, #tpu.memory_space<vmem>>, %arg5: memref<1x128xf32, #tpu.memory_space<vmem>>, %arg6: memref<16x128xbf16, #tpu.memory_space<vmem>>, %arg7: memref<32x128xbf16, #tpu.memory_space<vmem>>) attributes {dimension_semantics = [#tpu.dimension_semantics<parallel>], iteration_bounds = array<i64: 2>, scalar_prefetch = 0 : i64, scratch_operands = 1 : i64, tpu.core_type = #tpu.core_type<tc>, window_params = [{transform_indices = @transform_0, window_bounds = array<i64: 24, 64>}, {pipeline_mode = #tpu.pipeline_mode<synchronous>, transform_indices = @transform_1, window_bounds = array<i64: 3, 64, 128>}, {pipeline_mode = #tpu.pipeline_mode<synchronous>, transform_indices = @transform_2, window_bounds = array<i64: 1, 128>}, {pipeline_mode = #tpu.pipeline_mode<synchronous>, transform_indices = @transform_3, window_bounds = array<i64: 3, 128, 128>}, {pipeline_mode = #tpu.pipeline_mode<synchronous>, transform_indices = @transform_4, window_bounds = array<i64: 1, 128>}, {transform_indices = @transform_5, window_bounds = array<i64: 16, 128>}]} {
    %c0 = arith.constant 0 : index
    %c0_0 = arith.constant 0 : index
    %0 = vector.load %arg1[%c0, %c0_0] : memref<24x64xbf16, #tpu.memory_space<vmem>>, vector<22x64xbf16>
    %c0_1 = arith.constant 0 : index
    %c0_2 = arith.constant 0 : index
    %c0_3 = arith.constant 0 : index
    %1 = vector.load %arg2[%c0_1, %c0_2, %c0_3] : memref<3x64x128xbf16, #tpu.memory_space<vmem>>, vector<1x64x128xbf16>
    %2 = vector.shape_cast %1 : vector<1x64x128xbf16> to vector<64x128xbf16>
    %cst = arith.constant dense<0.000000e+00> : vector<22x128xf32>
    %3 = tpu.matmul %0, %2, %cst {dimension_numbers = #tpu.dot_dimension_numbers<[1], [0], [0], [1], [0, 0, 1, 1], [], []>} : vector<22x64xbf16>, vector<64x128xbf16>, vector<22x128xf32> -> vector<22x128xf32>
    %c1 = arith.constant 1 : index
    %c0_4 = arith.constant 0 : index
    %4 = vector.load %arg1[%c1, %c0_4] : memref<24x64xbf16, #tpu.memory_space<vmem>>, vector<22x64xbf16>
    %c1_5 = arith.constant 1 : index
    %c0_6 = arith.constant 0 : index
    %c0_7 = arith.constant 0 : index
    %5 = vector.load %arg2[%c1_5, %c0_6, %c0_7] : memref<3x64x128xbf16, #tpu.memory_space<vmem>>, vector<1x64x128xbf16>
    %6 = vector.shape_cast %5 : vector<1x64x128xbf16> to vector<64x128xbf16>
    %cst_8 = arith.constant dense<0.000000e+00> : vector<22x128xf32>
    %7 = tpu.matmul %4, %6, %cst_8 {dimension_numbers = #tpu.dot_dimension_numbers<[1], [0], [0], [1], [0, 0, 1, 1], [], []>} : vector<22x64xbf16>, vector<64x128xbf16>, vector<22x128xf32> -> vector<22x128xf32>
    %8 = arith.addf %3, %7 : vector<22x128xf32>
    %c2 = arith.constant 2 : index
    %c0_9 = arith.constant 0 : index
    %9 = vector.load %arg1[%c2, %c0_9] : memref<24x64xbf16, #tpu.memory_space<vmem>>, vector<22x64xbf16>
    %c2_10 = arith.constant 2 : index
    %c0_11 = arith.constant 0 : index
    %c0_12 = arith.constant 0 : index
    %10 = vector.load %arg2[%c2_10, %c0_11, %c0_12] : memref<3x64x128xbf16, #tpu.memory_space<vmem>>, vector<1x64x128xbf16>
    %11 = vector.shape_cast %10 : vector<1x64x128xbf16> to vector<64x128xbf16>
    %cst_13 = arith.constant dense<0.000000e+00> : vector<22x128xf32>
    %12 = tpu.matmul %9, %11, %cst_13 {dimension_numbers = #tpu.dot_dimension_numbers<[1], [0], [0], [1], [0, 0, 1, 1], [], []>} : vector<22x64xbf16>, vector<64x128xbf16>, vector<22x128xf32> -> vector<22x128xf32>
    %13 = arith.addf %8, %12 : vector<22x128xf32>
    %cst_14 = arith.constant 0.000000e+00 : bf16
    %14 = vector.broadcast %cst_14 : bf16 to vector<8x128xbf16>
    %cst_15 = arith.constant 0.000000e+00 : bf16
    %15 = vector.broadcast %cst_15 : bf16 to vector<8x128xbf16>
    %c0_16 = arith.constant 0 : index
    %c0_17 = arith.constant 0 : index
    %16 = vector.load %arg7[%c0_16, %c0_17] : memref<32x128xbf16, #tpu.memory_space<vmem>>, vector<8x128xbf16>
    tpu.vector_store %arg7[%c0_16, %c0_17], %15 {strides = array<i32>} : memref<32x128xbf16, #tpu.memory_space<vmem>>, vector<8x128xbf16>,
    %17 = vector.extract_strided_slice %13 {offsets = [0, 0], sizes = [16, 128], strides = [1, 1]} : vector<22x128xf32> to vector<16x128xf32>
    %c0_18 = arith.constant 0 : index
    %c0_19 = arith.constant 0 : index
    %18 = vector.load %arg3[%c0_18, %c0_19] : memref<1x128xf32, #tpu.memory_space<vmem>>, vector<1x128xf32>
    %19 = vector.broadcast %18 : vector<1x128xf32> to vector<16x128xf32>
    %20 = arith.addf %17, %19 : vector<16x128xf32>
    %cst_20 = arith.constant 0.000000e+00 : f32
    %21 = vector.broadcast %cst_20 : f32 to vector<16x128xf32>
    %22 = arith.maximumf %20, %21 : vector<16x128xf32>
    %23 = arith.truncf %22 : vector<16x128xf32> to vector<16x128xbf16>
    %c8 = arith.constant 8 : index
    %c0_21 = arith.constant 0 : index
    %24 = vector.load %arg7[%c8, %c0_21] : memref<32x128xbf16, #tpu.memory_space<vmem>>, vector<16x128xbf16>
    tpu.vector_store %arg7[%c8, %c0_21], %23 {strides = array<i32>} : memref<32x128xbf16, #tpu.memory_space<vmem>>, vector<16x128xbf16>,
    %c24 = arith.constant 24 : index
    %c0_22 = arith.constant 0 : index
    %25 = vector.load %arg7[%c24, %c0_22] : memref<32x128xbf16, #tpu.memory_space<vmem>>, vector<8x128xbf16>
    tpu.vector_store %arg7[%c24, %c0_22], %14 {strides = array<i32>} : memref<32x128xbf16, #tpu.memory_space<vmem>>, vector<8x128xbf16>,
    %c7 = arith.constant 7 : index
    %c0_23 = arith.constant 0 : index
    %26 = vector.load %arg7[%c7, %c0_23] : memref<32x128xbf16, #tpu.memory_space<vmem>>, vector<22x128xbf16>
    %c0_24 = arith.constant 0 : index
    %c0_25 = arith.constant 0 : index
    %c0_26 = arith.constant 0 : index
    %27 = vector.load %arg4[%c0_24, %c0_25, %c0_26] : memref<3x128x128xbf16, #tpu.memory_space<vmem>>, vector<1x128x128xbf16>
    %28 = vector.shape_cast %27 : vector<1x128x128xbf16> to vector<128x128xbf16>
    %cst_27 = arith.constant dense<0.000000e+00> : vector<22x128xf32>
    %29 = tpu.matmul %26, %28, %cst_27 {dimension_numbers = #tpu.dot_dimension_numbers<[1], [0], [0], [1], [0, 0, 1, 1], [], []>} : vector<22x128xbf16>, vector<128x128xbf16>, vector<22x128xf32> -> vector<22x128xf32>
    %c8_28 = arith.constant 8 : index
    %c0_29 = arith.constant 0 : index
    %30 = vector.load %arg7[%c8_28, %c0_29] : memref<32x128xbf16, #tpu.memory_space<vmem>>, vector<22x128xbf16>
    %c1_30 = arith.constant 1 : index
    %c0_31 = arith.constant 0 : index
    %c0_32 = arith.constant 0 : index
    %31 = vector.load %arg4[%c1_30, %c0_31, %c0_32] : memref<3x128x128xbf16, #tpu.memory_space<vmem>>, vector<1x128x128xbf16>
    %32 = vector.shape_cast %31 : vector<1x128x128xbf16> to vector<128x128xbf16>
    %cst_33 = arith.constant dense<0.000000e+00> : vector<22x128xf32>
    %33 = tpu.matmul %30, %32, %cst_33 {dimension_numbers = #tpu.dot_dimension_numbers<[1], [0], [0], [1], [0, 0, 1, 1], [], []>} : vector<22x128xbf16>, vector<128x128xbf16>, vector<22x128xf32> -> vector<22x128xf32>
    %34 = arith.addf %29, %33 : vector<22x128xf32>
    %c9 = arith.constant 9 : index
    %c0_34 = arith.constant 0 : index
    %35 = vector.load %arg7[%c9, %c0_34] : memref<32x128xbf16, #tpu.memory_space<vmem>>, vector<22x128xbf16>
    %c2_35 = arith.constant 2 : index
    %c0_36 = arith.constant 0 : index
    %c0_37 = arith.constant 0 : index
    %36 = vector.load %arg4[%c2_35, %c0_36, %c0_37] : memref<3x128x128xbf16, #tpu.memory_space<vmem>>, vector<1x128x128xbf16>
    %37 = vector.shape_cast %36 : vector<1x128x128xbf16> to vector<128x128xbf16>
    %cst_38 = arith.constant dense<0.000000e+00> : vector<22x128xf32>
    %38 = tpu.matmul %35, %37, %cst_38 {dimension_numbers = #tpu.dot_dimension_numbers<[1], [0], [0], [1], [0, 0, 1, 1], [], []>} : vector<22x128xbf16>, vector<128x128xbf16>, vector<22x128xf32> -> vector<22x128xf32>
    %39 = arith.addf %34, %38 : vector<22x128xf32>
    %40 = vector.extract_strided_slice %39 {offsets = [0, 0], sizes = [16, 128], strides = [1, 1]} : vector<22x128xf32> to vector<16x128xf32>
    %c0_39 = arith.constant 0 : index
    %c0_40 = arith.constant 0 : index
    %41 = vector.load %arg5[%c0_39, %c0_40] : memref<1x128xf32, #tpu.memory_space<vmem>>, vector<1x128xf32>
    %42 = vector.broadcast %41 : vector<1x128xf32> to vector<16x128xf32>
    %43 = arith.addf %40, %42 : vector<16x128xf32>
    %cst_41 = arith.constant 0.000000e+00 : f32
    %44 = vector.broadcast %cst_41 : f32 to vector<16x128xf32>
    %45 = arith.maximumf %43, %44 : vector<16x128xf32>
    %46 = arith.truncf %45 : vector<16x128xf32> to vector<16x128xbf16>
    %c0_42 = arith.constant 0 : index
    %c0_43 = arith.constant 0 : index
    %47 = vector.load %arg6[%c0_42, %c0_43] : memref<16x128xbf16, #tpu.memory_space<vmem>>, vector<16x128xbf16>
    tpu.vector_store %arg6[%c0_42, %c0_43], %46 {strides = array<i32>} : memref<16x128xbf16, #tpu.memory_space<vmem>>, vector<16x128xbf16>,
    return
  }
  func.func @transform_0(%arg0: i32) -> (i32, i32) {
    %c0_i32 = arith.constant 0 : i32
    %c0_i32_0 = arith.constant 0 : i32
    return %arg0, %c0_i32 : i32, i32
  }
  func.func @transform_1(%arg0: i32) -> (i32, i32, i32) {
    %c0_i32 = arith.constant 0 : i32
    %c0_i32_0 = arith.constant 0 : i32
    %c0_i32_1 = arith.constant 0 : i32
    %c0_i32_2 = arith.constant 0 : i32
    return %c0_i32, %c0_i32_0, %c0_i32_1 : i32, i32, i32
  }
  func.func @transform_2(%arg0: i32) -> (i32, i32) {
    %c0_i32 = arith.constant 0 : i32
    %c0_i32_0 = arith.constant 0 : i32
    %c0_i32_1 = arith.constant 0 : i32
    return %c0_i32, %c0_i32_0 : i32, i32
  }
  func.func @transform_3(%arg0: i32) -> (i32, i32, i32) {
    %c0_i32 = arith.constant 0 : i32
    %c0_i32_0 = arith.constant 0 : i32
    %c0_i32_1 = arith.constant 0 : i32
    %c0_i32_2 = arith.constant 0 : i32
    return %c0_i32, %c0_i32_0, %c0_i32_1 : i32, i32, i32
  }
  func.func @transform_4(%arg0: i32) -> (i32, i32) {
    %c0_i32 = arith.constant 0 : i32
    %c0_i32_0 = arith.constant 0 : i32
    %c0_i32_1 = arith.constant 0 : i32
    return %c0_i32, %c0_i32_0 : i32, i32
  }
  func.func @transform_5(%arg0: i32) -> (i32, i32) {
    %c0_i32 = arith.constant 0 : i32
    %c0_i32_0 = arith.constant 0 : i32
    return %arg0, %c0_i32 : i32, i32
  }
}

</mosaic_0001>

<bundles_post_ra>
// kernel: conv_block_forward.1
= control target key start
LH: loop header
LB: loop body
LE: loop exit
PB: predicated region body
PF: predicated region fallthrough
CT: control target
= control target key end

     0   :  { %s1384_s18 = smov 0   ;;  %s1528_s0 = inlined_call_operand.vmem [shape: bf16[48,64], index: 0, kind: input, shape index: {}]   ;;  %s1529_s1 = inlined_call_operand.vmem [shape: bf16[3,64,128], index: 1, kind: input, shape index: {}]   ;;  %s1530_s2 = inlined_call_operand.vmem [shape: f32[1,128], index: 2, kind: input, shape index: {}]   ;;  %s1531_s3 = inlined_call_operand.vmem [shape: bf16[3,128,128], index: 3, kind: input, shape index: {}]   ;;  %s1532_s4 = inlined_call_operand.vmem [shape: f32[1,128], index: 4, kind: input, shape index: {}]   ;;  %s1533_s5 = inlined_call_operand.vmem [shape: bf16[32,128], index: 5, kind: output, shape index: {}]  }
   0x1 LB: > { %s1023_s19 = sadd.s32 4294967295, %s1351_s18   ;;  %p1027_p0 = scmp.ge.s32.totalorder %s1351_s18, 1  ;;  %s1351_s18 = sphi %s1384_s18, %s15_s18  }
   0x2   : > { %p188_p1 = scmp.lt.s32.totalorder %s1351_s18, 3 }
   0x4   : > { %p189_p2 = pnand %p1027_p0, %p188_p1 }
   0x5   : > { %s216_s22 = smul.u32 (!%p189_p2), 3, %s1023_s19  ;;  %s1029_s30 = sshll.u32 (!%p189_p2), %s1023_s19, 1 }
   0x6   : > { %192 = sbr.rel (%p189_p2) target bundleno = 502 (0x1f6), region = 40  ;;  %p223_p4 = scmp.lt.s32.totalorder (!%p189_p2), %s1029_s30, 3 }
   0x7   : > { %p217_p3 = scmp.lt.s32.totalorder (!%p189_p2), %s216_s22, 5 }
   0xb   : > { %v1300_v0 = vld [vmem:[%s1529_s1 + $0x38] sm:$0xff]   ;;  %v1302_v2 = vld [vmem:[%s1529_s1 + $0x30] sm:$0xff]   ;;  %v1304_v4 = vld [vmem:[%s1529_s1 + $0x28] sm:$0xff]   ;;  %s1535_s22 = smov (!%p217_p3, %s216_s22), 5  ;;  %vm298_vm0 = vcmask 523264   ;;  %vm444_vm1 = vcmask 1046528  }
   0xc   : > { %v1301_v1 = vld [vmem:[%s1529_s1 + $0x18] sm:$0xff]   ;;  %1195 = vmatprep.subr.bf16.mxu0 %v1300_v0  ;;  %v1303_v3 = vld [vmem:[%s1529_s1 + $0x10] sm:$0xff]   ;;  %v1305_v5 = vld [vmem:[%s1529_s1 + $0x8] sm:$0xff]   ;;  %s1028_s8 = sshll.u32 %s1535_s22, 2  ;;  %vm258_vm2 = vsmask.f32 7424 }
   0xd   : > { %1207 = vmatprep.subr.bf16.mxu1 %v1301_v1  ;;  %1196 = vmatpush3.bf16.msra.mxu0 %v1300_v0  ;;  %v1306_v6 = vld [vmem:[%s1529_s1 + $0x20] sm:$0xff]   ;;  %s220_s13 = scalar_lea.vmem %s1528_s0, %s1028_s8  ;;  %v1311_v16 = vld [vmem:[%s1529_s1 + $0x58] sm:$0xff]   ;;  %v1312_v22 = vld [vmem:[%s1529_s1 + $0x50] sm:$0xff]   ;;  %v1353_v41 = vmov 0   ;;  %vm696_vm3 = vsmask.f32 4352 }
   0xe   : > { %1208 = vmatpush3.bf16.msra.mxu1 %v1301_v1  ;;  %1197 = vmatprep.subr.bf16.mxu0 %v1302_v2  ;;  %v229_v7 = vld [vmem:[%s220_s13] sm:$0xf]  ;;  %v230_v8 = vld [vmem:[%s220_s13 + $0x4] sm:$0xf]  ;;  %v1309_v11 = vld [vmem:[%s220_s13 + $0x8] ss:$0 sps:$4 sm:$0xff]  }
   0xf   : > { %1209 = vmatprep.subr.bf16.mxu1 %v1303_v3  ;;  %v1307_v9 = vld [vmem:[%s1529_s1] sm:$0xff]   ;;  %v1039_v10 = vcombine.low %v229_v7, %v230_v8  ;;  %v267_v14 = vshll.u32 %v1309_v11, 16  ;;  %v271_v15 = vshrl.u32 %v1309_v11, 16  ;;  %v1310_v19 = vld [vmem:[%s220_s13 + $0x8] ss:$0 sps:$4 sm:$0x77]  }
  0x10   : > { %v431_v23 = vld [vmem:[%s220_s13] sm:$0xe]  ;;  %v446_v24 = vrot.slane %v1309_v11, 1  ;;  %v1313_v28 = vld [vmem:[%s1529_s1 + $0x48] sm:$0xff]   ;;  %v1316_v31 = vld [vmem:[%s1531_s3 + $0x78] sm:$0xff]   ;;  %s1537_s30 = smov (!%p223_p4, %s1029_s30), 3 }
  0x11   : > { %1198 = vmatpush3.bf16.msra.mxu0 %v1302_v2  ;;  %v260_v12 = vshrl.u32 %v1039_v10, 16  ;;  %v262_v13 = vshll.u32 %v1039_v10, 16  ;;  %1215 = vmatprep.mubr.msk.bf16.mxu1 %vm298_vm0, %v1039_v10  ;;  %v269_v18 = vrot.slane %v267_v14, 1  ;;  %v1062_v25 = vcombine.low %v431_v23, %v230_v8  ;;  %v1314_v30 = vld [vmem:[%s1529_s1 + $0x40] sm:$0xff]   ;;  %v1317_v32 = vld [vmem:[%s1531_s3 + $0x70] sm:$0xff]   ;;  %v1318_v33 = vld [vmem:[%s1531_s3 + $0x68] sm:$0xff]  }
  0x12   : > { %1210 = vmatpush3.bf16.msra.mxu1 %v1303_v3  ;;  %1199 = vmatprep.subr.bf16.mxu0 %v1304_v4  ;;  %v1319_v34 = vld [vmem:[%s1531_s3 + $0x38] sm:$0xff]   ;;  %v1320_v35 = vld [vmem:[%s1531_s3 + $0x60] sm:$0xff]   ;;  %v1321_v36 = vld [vmem:[%s1531_s3 + $0x30] sm:$0xff]   ;;  %527 = vst [vmem:[#allocation2] sm:$0xf] %v1353_v41  ;;  %s1030_s8 = sshll.u32 %s1537_s30, 2 }
  0x13   : > { %1211 = vmatprep.subr.bf16.mxu1 %v1305_v5  ;;  %v264_v17 = vrot.slane %v262_v13, 1  ;;  %v273_v21 = vor.u32 %v271_v15, %v269_v18  ;;  %v445_v27 = vrot.slane %v1062_v25, 1  ;;  %v1322_v37 = vld [vmem:[%s1531_s3 + $0x58] sm:$0xff]   ;;  %v1323_v38 = vld [vmem:[%s1531_s3 + $0x28] sm:$0xff]   ;;  %v1324_v39 = vld [vmem:[%s1531_s3 + $0x50] sm:$0xff]   ;;  %s226_s10 = scalar_lea.vmem %s1533_s5, %s1030_s8 }
  0x14   : > { %v1325_v40 = vld [vmem:[%s1531_s3 + $0x20] sm:$0xff]   ;;  %549 = vst [vmem:[#allocation2 + $0xc] sm:$0xf] %v1353_v41  ;;  %v1326_v42 = vld [vmem:[%s1531_s3 + $0x48] sm:$0xff]   ;;  %v1327_v43 = vld [vmem:[%s1531_s3 + $0x18] sm:$0xff]  }
  0x15   : > { %1200 = vmatpush3.bf16.msra.mxu0 %v1304_v4  ;;  %v265_v20 = vor.u32 %v264_v17, %v260_v12  ;;  %v447_v29 = vsel %vm444_vm1, %v445_v27, %v446_v24  ;;  %v1328_v44 = vld [vmem:[%s1531_s3 + $0x40] sm:$0xff]   ;;  %v1329_v45 = vld [vmem:[%s1531_s3 + $0x10] sm:$0xff]   ;;  %v1333_v46 = vld [vmem:[%s1531_s3 + $0x8] sm:$0xff]  }
  0x16   : > { %1212 = vmatpush3.bf16.msra.mxu1 %v1305_v5  ;;  %1201 = vmatprep.subr.bf16.mxu0 %v1306_v6  ;;  %v1334_v47 = vld [vmem:[%s1531_s3 + $0xb8] sm:$0xff]   ;;  %v1336_v48 = vld [vmem:[%s1531_s3] sm:$0xff]  }
  0x17   : > { %1213 = vmatprep.subr.bf16.mxu1 %v1307_v9  ;;  %v270_v26 = vsel %vm258_vm2, %v265_v20, %v269_v18  ;;  %v1069_v60 = vld [vmem:[%s1530_s2] ss:$0 sm:$0xff]  ;;  %v1337_v20 = vld [vmem:[%s1531_s3 + $0xb0] sm:$0xff]  }
  0x18   : > { %1203 = vmatprep.mubr.msk.bf16.mxu0 %vm298_vm0, %v270_v26  ;;  %v1344_v41 = vld [vmem:[%s1531_s3 + $0x80] sm:$0xff]  }
  0x19   : > { %1202 = vmatpush3.bf16.msra.mxu0 %v1306_v6  ;;  %v550_v8 = vld [vmem:[#allocation2] sm:$0x8] }
  0x1a   : > { %1214 = vmatpush3.bf16.msra.mxu1 %v1307_v9  ;;  %1219 = vmatprep.subr.bf16.mxu0 %v1311_v16 }
  0x1b   : > { %1231 = vmatprep.subr.bf16.mxu1 %v1316_v31  ;;  %v1338_v10 = vld [vmem:[#allocation2 + $0xc] ss:$0 sps:$4 sm:$0xff]  }
  0x1c   : > { %1204 = vmatmul.mubr.msk.bf16.vlgmr.msra.gmra.mxu0 %vm298_vm0, %v273_v21  ;;  %v553_v11 = vld [vmem:[#allocation2 + $0xc] sm:$0x7]  ;;  %v840_v17 = vshll.u32 %v1338_v10, 16 }
  0x1d   : > { %1216 = vmatmul.mubr.msk.bf16.vlgmr.msra.gmra.mxu1 %vm298_vm0, %v1310_v19  ;;  %1220 = vmatpush3.bf16.msra.mxu0 %v1311_v16  ;;  %v1089_v16 = vcombine.low %v553_v11, %v553_v11 }
  0x1e   : > { %1221 = vmatprep.subr.bf16.mxu0 %v1312_v22  ;;  %1227 = vmatprep.mubr.msk.bf16.mxu0 %vm298_vm0, %v447_v29  ;;  %v842_v26 = vrot.slane %v840_v17, 1 }
  0x1f   : > { %1232 = vmatpush3.bf16.msra.mxu1 %v1316_v31 }
  0x20   : > { %1233 = vmatprep.subr.bf16.mxu1 %v1317_v32 }
  0x21   : > { %1222 = vmatpush3.bf16.msra.mxu0 %v1312_v22 }
  0x22   : > { %1223 = vmatprep.subr.bf16.mxu0 %v1313_v28 }
  0x23   : > { %1234 = vmatpush3.bf16.msra.mxu1 %v1317_v32 }
  0x24   : > { %1235 = vmatprep.subr.bf16.mxu1 %v1318_v33 }
  0x25   : > { %1224 = vmatpush3.bf16.msra.mxu0 %v1313_v28 }
  0x26   : > { %1225 = vmatprep.subr.bf16.mxu0 %v1314_v30 }
  0x27   : > { %1236 = vmatpush3.bf16.msra.mxu1 %v1318_v33 }
  0x28   : > { %1237 = vmatprep.subr.bf16.mxu1 %v1320_v35 }
  0x29   : > { %1226 = vmatpush3.bf16.msra.mxu0 %v1314_v30 }
  0x2a   : > { %1251 = vmatprep.subr.bf16.mxu0 %v1319_v34 }
  0x2b   : > { %1238 = vmatpush3.bf16.msra.mxu1 %v1320_v35 }
  0x2c   : > { %1228 = vmatmul.mubr.msk.bf16.vlgmr.msra.gmra.mxu0 %vm298_vm0, %v446_v24  ;;  %1239 = vmatprep.subr.bf16.mxu1 %v1322_v37 }
  0x2d   : > { %1252 = vmatpush3.bf16.msra.mxu0 %v1319_v34  ;;  %v1339_v34 = vld [vmem:[%s1531_s3 + $0xa8] sm:$0xff]  }
  0x2e   : > { %1253 = vmatprep.subr.bf16.mxu0 %v1321_v36 }
  0x2f   : > { %1240 = vmatpush3.bf16.msra.mxu1 %v1322_v37  ;;  %v1340_v37 = vld [vmem:[%s1531_s3 + $0xa0] sm:$0xff]  }
  0x30   : > { %1241 = vmatprep.subr.bf16.mxu1 %v1324_v39 }
  0x31   : > { %1254 = vmatpush3.bf16.msra.mxu0 %v1321_v36 }
  0x32   : > { %1255 = vmatprep.subr.bf16.mxu0 %v1323_v38 }
  0x33   : > { %1242 = vmatpush3.bf16.msra.mxu1 %v1324_v39  ;;  %v1342_v39 = vld [vmem:[%s1531_s3 + $0x90] sm:$0xff]  }
  0x34   : > { %1243 = vmatprep.subr.bf16.mxu1 %v1326_v42 }
  0x35   : > { %1256 = vmatpush3.bf16.msra.mxu0 %v1323_v38  ;;  %v1341_v38 = vld [vmem:[%s1531_s3 + $0x98] sm:$0xff]  }
  0x36   : > { %1257 = vmatprep.subr.bf16.mxu0 %v1325_v40 }
  0x37   : > { %1244 = vmatpush3.bf16.msra.mxu1 %v1326_v42  ;;  %v844_v42 = vshrl.u32 %v1338_v10, 16 }
  0x38   : > { %1245 = vmatprep.subr.bf16.mxu1 %v1328_v44 }
  0x39   : > { %1258 = vmatpush3.bf16.msra.mxu0 %v1325_v40  ;;  %v1343_v40 = vld [vmem:[%s1531_s3 + $0x88] sm:$0xff]  }
  0x3a   : > { %1259 = vmatprep.subr.bf16.mxu0 %v1327_v43 }
  0x3b   : > { %1246 = vmatpush3.bf16.msra.mxu1 %v1328_v44 }
  0x3c   : > { %1271 = vmatprep.subr.bf16.mxu1 %v1334_v47 }
  0x3d   : > { %1260 = vmatpush3.bf16.msra.mxu0 %v1327_v43  ;;  %v846_v43 = vor.u32 %v844_v42, %v842_v26 }
  0x3e   : > { %1261 = vmatprep.subr.bf16.mxu0 %v1329_v45 }
  0x41   : > { %1262 = vmatpush3.bf16.msra.mxu0 %v1329_v45 }
  0x42   : > { %1263 = vmatprep.subr.bf16.mxu0 %v1333_v46 }
  0x45   : > { %1264 = vmatpush3.bf16.msra.mxu0 %v1333_v46 }
  0x46   : > { %1265 = vmatprep.subr.bf16.mxu0 %v1336_v48 }
  0x49   : > { %1266 = vmatpush3.bf16.msra.mxu0 %v1336_v48 }
  0xdc   : > { %v1205_v49 = vpop.f32.mrf.mxu0 }
  0xdd   : > { %v1217_v50 = vpop.f32.mrf.mxu1 }
  0xde   : > { %v339_v51 = vpop.f32.mrf.mxu0 }
  0xdf   : > { %v418_v52 = vpop.f32.mrf.mxu1 }
  0xe0   : > { %v1206_v53 = vpop.f32.mrf.mxu0  ;;  %v419_v57 = vadd.f32 %v418_v52, %v339_v51 }
  0xe1   : > { %v1218_v54 = vpop.f32.mrf.mxu1 }
  0xe2   : > { %v342_v55 = vpop.f32.mrf.mxu0 }
  0xe3   : > { %v421_v58 = vpop.f32.mrf.mxu1 }
  0xe4   : > { %v422_v63 = vadd.f32 %v421_v58, %v342_v55 }
  0xec   : > { %v1229_v56 = vpop.f32.mrf.mxu0 }
  0xed   : > { %v1133_v56 = vld [vmem:[%s1532_s4] ss:$0 sm:$0xff] }
  0xee   : > { %v512_v59 = vpop.f32.mrf.mxu0 }
  0xef   : > { %v525_v61 = vadd.f32 %v512_v59, %v419_v57 }
  0xf0   : > { %v1230_v62 = vpop.f32.mrf.mxu0 }
  0xf1   : > { %v535_v0 = vadd.f32 %v1069_v60, %v525_v61 }
  0xf2   : > { %v515_v1 = vpop.f32.mrf.mxu0 }
  0xf3   : > { %v537_v2 = vmax.f32 %v535_v0, 0.0  ;;  %v526_v3 = vadd.f32 %v515_v1, %v422_v63 }
  0xf5   : > { %v1138_v4 = vpack.c.bf16 %v537_v2, %v537_v2  ;;  %v536_v5 = vadd.f32 %v1069_v60, %v526_v3 }
  0xf7   : > { %547 = vst [vmem:[#allocation2 + $0x4] sm:$0xf] %v1138_v4  ;;  %v538_v6 = vmax.f32 %v536_v5, 0.0 }
  0xf9   : > { %v1139_v7 = vpack.c.bf16 %v538_v6, %v538_v6 }
  0xfb   : > { %548 = vst [vmem:[#allocation2 + $0x8] sm:$0xf] %v1139_v7 }
  0xfe   : > { %v551_v9 = vld [vmem:[#allocation2 + $0x4] sm:$0xf] }
  0xff   : > { %v1098_v12 = vcombine.low %v550_v8, %v551_v9 }
 0x101   : > { %v698_v13 = vshrl.u32 %v1098_v12, 16  ;;  %v701_v14 = vshll.u32 %v1098_v12, 16 }
 0x102   : > { %v552_v15 = vld [vmem:[#allocation2 + $0x8] sm:$0xf] }
 0x103   : > { %v1088_v18 = vcombine.low %v551_v9, %v552_v15  ;;  %v1099_v19 = vcombine.low %v552_v15, %v553_v11  ;;  %v700_v21 = vrot.slane %v698_v13, 3  ;;  %v703_v25 = vrot.slane %v701_v14, 4 }
 0x105   : > { %1247 = vmatprep.mubr.bf16.mxu1 %v1088_v18  ;;  %v706_v22 = vshrl.u32 %v1099_v19, 16  ;;  %v709_v23 = vshll.u32 %v1099_v19, 16  ;;  %v835_v24 = vshll.u32 %v1088_v18, 16  ;;  %v833_v29 = vshrl.u32 %v1088_v18, 16 }
 0x106   : > { %1248 = vmatmul.mubr.bf16.vlgmr.msra.gmra.mxu1 %v1089_v16  ;;  %v704_v31 = vor.u32 %v703_v25, %v700_v21 }
 0x107   : > { %1272 = vmatpush3.bf16.msra.mxu1 %v1334_v47  ;;  %v708_v27 = vrot.slane %v706_v22, 3  ;;  %v711_v28 = vrot.slane %v709_v23, 4  ;;  %v837_v30 = vrot.slane %v835_v24, 1 }
 0x108   : > { %1273 = vmatprep.subr.bf16.mxu1 %v1337_v20 }
 0x109   : > { %v712_v32 = vor.u32 %v711_v28, %v708_v27  ;;  %v838_v33 = vor.u32 %v837_v30, %v833_v29 }
 0x10b   : > { %1274 = vmatpush3.bf16.msra.mxu1 %v1337_v20  ;;  %v713_v35 = vsel %vm696_vm3, %v704_v31, %v712_v32  ;;  %v843_v36 = vsel %vm258_vm2, %v838_v33, %v842_v26 }
 0x10c   : > { %1267 = vmatprep.mubr.bf16.mxu0 %v713_v35  ;;  %1287 = vmatprep.mubr.bf16.mxu1 %v843_v36 }
 0x10d   : > { %1268 = vmatmul.mubr.bf16.vlgmr.msra.gmra.mxu0 %v712_v32  ;;  %1275 = vmatprep.subr.bf16.mxu1 %v1339_v34 }
 0x10f   : > { %1276 = vmatpush3.bf16.msra.mxu1 %v1339_v34 }
 0x110   : > { %1277 = vmatprep.subr.bf16.mxu1 %v1340_v37 }
 0x113   : > { %1278 = vmatpush3.bf16.msra.mxu1 %v1340_v37 }
 0x114   : > { %1279 = vmatprep.subr.bf16.mxu1 %v1341_v38 }
 0x117   : > { %1280 = vmatpush3.bf16.msra.mxu1 %v1341_v38 }
 0x118   : > { %1281 = vmatprep.subr.bf16.mxu1 %v1342_v39 }
 0x11b   : > { %1282 = vmatpush3.bf16.msra.mxu1 %v1342_v39 }
 0x11c   : > { %1283 = vmatprep.subr.bf16.mxu1 %v1343_v40 }
 0x11f   : > { %1284 = vmatpush3.bf16.msra.mxu1 %v1343_v40 }
 0x120   : > { %1285 = vmatprep.subr.bf16.mxu1 %v1344_v41 }
 0x123   : > { %1286 = vmatpush3.bf16.msra.mxu1 %v1344_v41 }
 0x126   : > { %1288 = vmatmul.mubr.bf16.vlgmr.msra.gmra.mxu1 %v846_v43 }
 0x1c6   : > { %v1249_v44 = vpop.f32.mrf.mxu1 }
 0x1c8   : > { %v679_v45 = vpop.f32.mrf.mxu1 }
 0x1ca   : > { %v1250_v46 = vpop.f32.mrf.mxu1 }
 0x1cc   : > { %v682_v50 = vpop.f32.mrf.mxu1 }
 0x1cd   : > { %v1269_v47 = vpop.f32.mrf.mxu0 }
 0x1cf   : > { %v798_v48 = vpop.f32.mrf.mxu0 }
 0x1d0   : > { %v799_v52 = vadd.f32 %v798_v48, %v679_v45 }
 0x1d1   : > { %v1270_v49 = vpop.f32.mrf.mxu0 }
 0x1d3   : > { %v801_v53 = vpop.f32.mrf.mxu0 }
 0x1d4   : > { %v802_v58 = vadd.f32 %v801_v53, %v682_v50 }
 0x1e6   : > { %v1289_v51 = vpop.f32.mrf.mxu1 }
 0x1e8   : > { %v931_v54 = vpop.f32.mrf.mxu1 }
 0x1e9   : > { %v944_v55 = vadd.f32 %v931_v54, %v799_v52 }
 0x1ea   : > { %v1290_v57 = vpop.f32.mrf.mxu1 }
 0x1eb   : > { %v953_v60 = vadd.f32 %v1133_v56, %v944_v55 }
 0x1ec   : > { %v934_v59 = vpop.f32.mrf.mxu1 }
 0x1ed   : > { %v945_v61 = vadd.f32 %v934_v59, %v802_v58  ;;  %v955_v63 = vmax.f32 %v953_v60, 0.0 }
 0x1ef   : > { %v954_v62 = vadd.f32 %v1133_v56, %v945_v61 }
 0x1f1   : > { %v956_v0 = vmax.f32 %v954_v62, 0.0 }
 0x1f3   : > { %v1145_v1 = vpack.c.bf16 %v956_v0, %v955_v63 }
 0x1f5   : > { %1146 = vst [vmem:[%s226_s10] sm:$0xff] %v1145_v1  }
 0x1f6 PF: > { %s15_s18 = sadd.s32 1, %s1351_s18  }
 0x1f7   : > { %p12_p5 = scmp.ge.s32.totalorder %s15_s18, 4  }
 0x1f9   :  { %14 = sbr.rel (!%p12_p5) target bundleno = 1 (0x1), region = 74 }

</bundles_post_ra>
